<compile_context>
chip_gen: v6e
topology: v6e:2x2x1
jax: 0.10.0
libtpu: 0.0.40
codegen_flags: <defaults>
</compile_context>

<pallas_src>
import functools

import jax
import jax.numpy as jnp
from jax.experimental import pallas as pl
from jax.experimental.pallas import tpu as pltpu

_MiB = 1024 * 1024


# --------------------------------------------------------------------------- #
# Kernels
# --------------------------------------------------------------------------- #
def _residual_add_kernel(y_ref, x_ref, o_ref):
    # o = fn(x) + x, with fn(x) precomputed outside the kernel.
    o_ref[...] = (y_ref[...] + x_ref[...]).astype(o_ref.dtype)


def _residual_fused_kernel(x_ref, o_ref, *, fn):
    # o = fn(x) + x, with the (elementwise) fn traced into the kernel body.
    x = x_ref[...]
    o_ref[...] = (fn(x) + x).astype(o_ref.dtype)


# --------------------------------------------------------------------------- #
# Layout / budget helpers
# --------------------------------------------------------------------------- #
def _sublane_align(dtype):
    """Sublane row alignment: 8 rows per sublane group, scaled by dtype packing."""
    itemsize = jnp.dtype(dtype).itemsize
    if itemsize >= 4:
        return 8
    return 8 * (4 // itemsize)          # bf16 -> 16, int8/fp8 -> 32


def _vmem_limit_bytes():
    """Per-generation scoped VMEM limit: ~96 MiB on 128-MiB parts, 48 MiB on v7x."""
    try:
        cap = int(pltpu.get_tpu_info().vmem_capacity_bytes)
        return int(min(96 * _MiB, max(48 * _MiB, cap - 32 * _MiB)))
    except Exception:
        return 48 * _MiB


def _choose_layout(n, align):
    """Lane-dense (rows, lanes) view with lanes % 128 == 0 and rows % align == 0.

    Returns None if no such padding-free layout exists (caller falls back to XLA).
    """
    for lanes in (2048, 1024, 512, 256, 128):
        if n % lanes == 0 and (n // lanes) % align == 0:
            return n // lanes, lanes
    return None


def _choose_block_rows(rows, lanes, align, max_block_elems, want_multi_step):
    """Largest aligned row-tile dividing `rows` under the element budget.

    `rows` is guaranteed to be a positive multiple of `align`.  When
    `want_multi_step` is set the tile is additionally capped at ~rows/2 so the
    grid has >= 2 steps (keeps both v7x TensorCores busy).
    """
    max_rows = max(align, ((max_block_elems // lanes) // align) * align)
    target = min(rows, max_rows)
    if want_multi_step and rows >= 2 * align:
        target = min(target, max(align, (rows // 2 // align) * align))
    target = max(align, (target // align) * align)
    br = target
    while rows % br != 0:               # rows % align == 0 guarantees termination
        br -= align
    return br


# --------------------------------------------------------------------------- #
# Wrapper: Residual.forward(x) = fn(x) + x
# --------------------------------------------------------------------------- #
def residual_forward(fn, x, *, fused=False, fn_transcendentals_per_element=0):
    """Pallas-fused residual: returns fn(x) + x.

    fused=True  -> fn must be an elementwise (shape/tile-agnostic) JAX function;
                   it is applied inside the kernel (single HBM read of x).
    fused=False -> fn is any shape-preserving JAX function; fn(x) is computed
                   by XLA and only the residual add is fused in Pallas.
    """
    n = x.size
    if n == 0:
        return fn(x) + x

    # Result dtype follows the reference fn(x) + x promotion semantics.
    y_aval = jax.eval_shape(fn, jax.ShapeDtypeStruct(x.shape, x.dtype))
    assert y_aval.shape == x.shape, "Residual requires fn(x).shape == x.shape"
    out_dtype = jnp.result_type(x.dtype, y_aval.dtype)

    if fused:
        dtypes = (x.dtype, out_dtype)
        num_operands = 1
    else:
        dtypes = (x.dtype, y_aval.dtype, out_dtype)
        num_operands = 2

    align = max(_sublane_align(d) for d in dtypes)
    layout = _choose_layout(n, align)
    if layout is None:
        # No padding-free lane-dense layout (odd flattened size): plain XLA is
        # both correct and typically faster than an unpipelined single block.
        return fn(x) + x
    rows, lanes = layout

    # Byte-based block budget: (limit - headroom) / (operands+output) / 2 buffers.
    vmem_limit = _vmem_limit_bytes()
    max_itemsize = max(jnp.dtype(d).itemsize for d in dtypes)
    per_buf_bytes = max(
        _MiB, min(8 * _MiB, (vmem_limit - 8 * _MiB) // ((num_operands + 1) * 2))
    )
    max_block_elems = max(lanes * align, per_buf_bytes // max_itemsize)

    want_multi_step = n * max_itemsize >= 2 * _MiB
    block_rows = _choose_block_rows(rows, lanes, align, max_block_elems,
                                    want_multi_step)
    grid = (rows // block_rows,)
    blk = pl.BlockSpec((block_rows, lanes), lambda i: (i, 0))

    x2 = x.reshape(rows, lanes)               # metadata-only, no HBM pass

    io_aliases = {}
    if fused:
        operands = (x2,)
        kernel = functools.partial(_residual_fused_kernel, fn=fn)
    else:
        y = fn(x)
        operands = (y.reshape(rows, lanes), x2)
        kernel = _residual_add_kernel
        if jnp.dtype(y.dtype) == jnp.dtype(out_dtype):
            io_aliases = {0: 0}               # write the result into y's buffer

    out_itemsize = jnp.dtype(out_dtype).itemsize
    bytes_accessed = sum(n * jnp.dtype(op.dtype).itemsize for op in operands)
    bytes_accessed += n * out_itemsize
    cost = pl.CostEstimate(
        flops=2 * n,
        transcendentals=(int(fn_transcendentals_per_element) * n) if fused else 0,
        bytes_accessed=int(bytes_accessed),
    )

    out2 = pl.pallas_call(
        kernel,
        out_shape=jax.ShapeDtypeStruct((rows, lanes), out_dtype),
        grid_spec=pltpu.PrefetchScalarGridSpec(
            num_scalar_prefetch=0,
            grid=grid,
            in_specs=[blk] * len(operands),
            out_specs=blk,
        ),
        compiler_params=pltpu.CompilerParams(
            dimension_semantics=("parallel",),
            vmem_limit_bytes=int(vmem_limit),
        ),
        cost_estimate=cost,
        input_output_aliases=io_aliases,
    )(*operands)

    return out2.reshape(x.shape)


# --------------------------------------------------------------------------- #
# Demo / correctness check
# --------------------------------------------------------------------------- #
if __name__ == "__main__":
    key = jax.random.PRNGKey(0)
    kx, kw = jax.random.split(key)

    # Small shapes consistent with the unet context: x is (B, C, H, W).
    B, C, H, W = 2, 4, 16, 16
    x = jax.random.normal(kx, (B, C, H, W), jnp.float32)

    # Path 1: elementwise fn fused into the kernel (e.g. a SiLU non-linearity).
    silu = lambda t: t * jax.nn.sigmoid(t)
    out1 = jax.block_until_ready(
        residual_forward(silu, x, fused=True, fn_transcendentals_per_element=1)
    )
    ref1 = silu(x) + x
    assert out1.shape == x.shape and out1.dtype == ref1.dtype
    assert jnp.allclose(out1, ref1, atol=1e-5, rtol=1e-5), "mismatch (fused)"

    # Path 2: arbitrary shape-preserving fn (1x1 channel mix), add fused in Pallas.
    w = jax.random.normal(kw, (C, C), jnp.float32) * 0.2
    mix = lambda t: jnp.einsum("oc,bchw->bohw", w, t)
    out2 = jax.block_until_ready(residual_forward(mix, x, fused=False))
    ref2 = mix(x) + x
    assert out2.shape == x.shape
    assert jnp.allclose(out2, ref2, atol=1e-4, rtol=1e-4), "mismatch (general)"

    print("KERNEL_OK")
</pallas_src>

<mosaic_0001>
module attributes {stable_mosaic.version = 11 : i64} {
  func.func @_residual_fused_kernel(%arg0: i32, %arg1: memref<8x256xf32, #tpu.memory_space<vmem>>, %arg2: memref<8x256xf32, #tpu.memory_space<vmem>>) attributes {dimension_semantics = [#tpu.dimension_semantics<parallel>], iteration_bounds = array<i64: 1>, scalar_prefetch = 0 : i64, scratch_operands = 0 : i64, tpu.core_type = #tpu.core_type<tc>, window_params = [{transform_indices = @transform_0, window_bounds = array<i64: 8, 256>}, {transform_indices = @transform_1, window_bounds = array<i64: 8, 256>}]} {
    %c0 = arith.constant 0 : index
    %c0_0 = arith.constant 0 : index
    %0 = vector.load %arg1[%c0, %c0_0] : memref<8x256xf32, #tpu.memory_space<vmem>>, vector<8x256xf32>
    %1 = arith.negf %0 : vector<8x256xf32>
    %2 = math.exp %1 : vector<8x256xf32>
    %cst = arith.constant 1.000000e+00 : f32
    %3 = vector.broadcast %cst : f32 to vector<8x256xf32>
    %4 = arith.addf %3, %2 : vector<8x256xf32>
    %5 = arith.divf %3, %4 : vector<8x256xf32>
    %6 = arith.mulf %0, %5 : vector<8x256xf32>
    %7 = arith.addf %6, %0 : vector<8x256xf32>
    %c0_1 = arith.constant 0 : index
    %c0_2 = arith.constant 0 : index
    %8 = vector.load %arg2[%c0_1, %c0_2] : memref<8x256xf32, #tpu.memory_space<vmem>>, vector<8x256xf32>
    tpu.vector_store %arg2[%c0_1, %c0_2], %7 {strides = array<i32>} : memref<8x256xf32, #tpu.memory_space<vmem>>, vector<8x256xf32>,
    return
  }
  func.func @transform_0(%arg0: i32) -> (i32, i32) {
    %c0_i32 = arith.constant 0 : i32
    %c0_i32_0 = arith.constant 0 : i32
    return %arg0, %c0_i32 : i32, i32
  }
  func.func @transform_1(%arg0: i32) -> (i32, i32) {
    %c0_i32 = arith.constant 0 : i32
    %c0_i32_0 = arith.constant 0 : i32
    return %arg0, %c0_i32 : i32, i32
  }
}

</mosaic_0001>

<bundles_post_ra>
// kernel: tpu_custom_call.1
= control target key start
LH: loop header
LB: loop body
LE: loop exit
PB: predicated region body
PF: predicated region fallthrough
CT: control target
= control target key end

     0   :  { %6 = vsyncpa [#allocation3], 0  ;;  %s130_s0 = inlined_call_operand.hbm [shape: f32[8,256], index: 0, kind: input, shape index: {}]   ;;  %s131_s1 = inlined_call_operand.hbm [shape: f32[8,256], index: 1, kind: output, shape index: {}]  }
   0x1   :  { %7 = vsyncpa [#allocation4], 0  ;;  %s112_s6 = smov [#allocation2]  }
   0x2   :  { %s14_s7 = sshll.u32 %s112_s6, 4  ;;  %s15_s7 = int_to_ptr.vmem [resolvable:$true] %s14_s7 }
   0x3   :  { %s76_s8 = scalar_lea.vmem %s15_s7, 256  ;;  %p81_p1 = scmp.lt.s32.totalorder %s15_s7, %s15_s7 }
   0x4   :  { %p77_p0 = scmp.ne.s32.totalorder %s15_s7, %s76_s8  ;;  %p82_p2 = scmp.lt.s32.totalorder %s76_s8, %s76_s8 }
   0x6   :  { %p83_p3 = por %p82_p2, %p81_p1 }
   0x8   :  { %p84_p4 = pnand %p83_p3, %p77_p0 }
   0xa   :  { %87 = shalt.err (!%p84_p4)
}
   0xb   :  { %17 = dma.hbm_to_vmem [thread:$0]  %s130_s0, 256, %s15_s7, [#allocation3]  }
   0xc   :  { %108 = dma.done.wait [#allocation3], 256  }
   0xd   :  { %109 = vsyncadd [#allocation3], 4294967040  ;;  %v21_v0 = vld [vmem:[#allocation2] sm:$0xff]  ;;  %v22_v1 = vld [vmem:[#allocation2 + $0x8] sm:$0xff]  ;;  %s113_s11 = smov [#allocation5]  }
   0xe   :  { %v56_v2 = vmul.f32 -1.442695, %v21_v0  ;;  %v57_v3 = vmul.f32 -1.442695, %v22_v1  ;;  %s47_s12 = sshll.u32 %s113_s11, 4  ;;  %s48_s12 = int_to_ptr.vmem [resolvable:$true] %s47_s12 }
   0xf   :  { %s88_s0 = scalar_lea.vmem %s48_s12, 256  ;;  %p93_p6 = scmp.lt.s32.totalorder %s48_s12, %s48_s12 }
  0x10   :  { %60 = vpow2.f32 %v56_v2  ;;  %p89_p5 = scmp.ne.s32.totalorder %s48_s12, %s88_s0  ;;  %p94_p7 = scmp.lt.s32.totalorder %s88_s0, %s88_s0 }
  0x11   :  { %62 = vpow2.f32 %v57_v3 }
  0x12   :  { %p95_p8 = por %p94_p7, %p93_p6 }
  0x14   :  { %p96_p9 = pnand %p95_p8, %p89_p5 }
  0x1d   :  { %v61_v4 = vpop.eup %60 }
  0x1e   :  { %v63_v5 = vpop.eup %62  ;;  %v29_v6 = vadd.f32 1.0, %v61_v4 }
  0x1f   :  { %v30_v7 = vadd.f32 1.0, %v63_v5 }
  0x20   :  { %64 = vrcp.f32 %v29_v6 }
  0x21   :  { %66 = vrcp.f32 %v30_v7 }
  0x2d   :  { %v65_v8 = vpop.eup %64 }
  0x2e   :  { %v67_v9 = vpop.eup %66  ;;  %v35_v10 = vmul.f32 %v65_v8, %v21_v0 }
  0x2f   :  { %v36_v11 = vmul.f32 %v67_v9, %v22_v1 }
  0x30   :  { %v37_v12 = vadd.f32 %v35_v10, %v21_v0 }
  0x31   :  { %v38_v13 = vadd.f32 %v36_v11, %v22_v1 }
  0x32   :  { %39 = vst [vmem:[#allocation5] sm:$0xff] %v37_v12 }
  0x33   :  { %40 = vst [vmem:[#allocation5 + $0x8] sm:$0xff] %v38_v13 }
  0x34   :  { %99 = shalt.err (!%p96_p9)
}
  0x35   :  { %50 = dma.vmem_to_hbm [thread:$0]  %s48_s12, 256, %s131_s1, [#allocation4]  }
  0x36   :  { %110 = dma.done.wait [#allocation4], 256  }
  0x37   :  { %111 = vsyncadd [#allocation4], 4294967040 }
  0x38   :  { %54 = vsyncpa [#allocation3], 1 }
  0x39   :  { %55 = vsyncpa [#allocation4], 1 }

</bundles_post_ra>
